<compile_context>
chip_gen: v5e
topology: v5e:2x2
jax: 0.10.0
libtpu: 0.0.40
codegen_flags: <defaults>
</compile_context>

<pallas_src>
import math

import jax
import jax.numpy as jnp
from jax.experimental import pallas as pl
from jax.experimental.pallas import tpu as pltpu


def _make_pe_table(dim: int, max_len: int) -> jnp.ndarray:
    """Deterministic sinusoidal table, identical to the torch __init__."""
    assert dim % 2 == 0
    position = jnp.arange(0, max_len, dtype=jnp.float32)[:, None]            # (max_len, 1)
    div_term = jnp.exp(jnp.arange(0, dim, 2, dtype=jnp.float32)
                       * (-math.log(10000.0) / dim))                          # (dim//2,)
    angles = position * div_term[None, :]                                     # (max_len, dim//2)
    pe = jnp.zeros((max_len, dim), dtype=jnp.float32)
    pe = pe.at[:, 0::2].set(jnp.sin(angles))
    pe = pe.at[:, 1::2].set(jnp.cos(angles))
    return pe


def _round_up(x: int, mult: int) -> int:
    return ((x + mult - 1) // mult) * mult


def _pe2d_kernel(c_ref, pe_ref, out_ref):
    # c_ref:  (tile_m, 2) int32   -- (x_index, y_index) per output row
    # pe_ref: (tile_k, dim_pad) f32 -- one K-slab of the (padded) pe table
    # out_ref:(tile_m, dim_pad) f32 -- resident across the k axis (accumulator)
    k = pl.program_id(1)

    @pl.when(k == 0)
    def _init():
        out_ref[...] = jnp.zeros_like(out_ref)

    tm = c_ref.shape[0]
    tk = pe_ref.shape[0]

    xy = c_ref[...]                                                           # (tm, 2)
    x = xy[:, 0:1]                                                            # (tm, 1)
    y = xy[:, 1:2]                                                            # (tm, 1)

    # Global table-row ids covered by this K slab.
    row_ids = k * tk + jax.lax.broadcasted_iota(jnp.int32, (tm, tk), 1)       # (tm, tk)
    one_hot = (row_ids == x).astype(jnp.float32) + (row_ids == y).astype(jnp.float32)

    # (one_hot(x) + one_hot(y)) @ pe_slab  ==  partial(pe[x] + pe[y])
    out_ref[...] += jnp.dot(one_hot, pe_ref[...],
                            preferred_element_type=jnp.float32)


def positional_encoding_2d(coords: jnp.ndarray, pe: jnp.ndarray,
                           tile_m: int = 256, tile_k: int = 1024) -> jnp.ndarray:
    """coords: (..., 2) integer indices; pe: (max_len, dim); returns (..., dim) f32."""
    max_len, dim = pe.shape
    lead_shape = coords.shape[:-1]
    m = 1
    for s in lead_shape:
        m *= int(s)
    m = max(m, 1)

    # Lane-dense feature dim (unmasked stores / dense MXU N).
    dim_pad = _round_up(dim, 128)

    # K (table-row) tiling: 256-aligned, capped so one slab stays small in VMEM.
    tile_k = min(tile_k, _round_up(max_len, 256))
    max_len_pad = _round_up(max_len, tile_k)

    # Row tiling: fill the MXU, but don't over-pad tiny inputs.
    tile_m = min(tile_m, _round_up(m, 8))
    m_pad = _round_up(m, tile_m)

    # Single combined (m, 2) index input.
    c = coords.reshape(m, 2).astype(jnp.int32)
    if m_pad != m:
        c = jnp.pad(c, ((0, m_pad - m), (0, 0)))

    # Zero-pad the table; padded rows/cols contribute exactly zero.
    pe_p = pe.astype(jnp.float32)
    if (max_len_pad, dim_pad) != (max_len, dim):
        pe_p = jnp.pad(pe_p, ((0, max_len_pad - max_len), (0, dim_pad - dim)))

    grid = (m_pad // tile_m, max_len_pad // tile_k)

    cost = pl.CostEstimate(
        flops=2 * m_pad * max_len_pad * dim_pad,
        transcendentals=0,
        bytes_accessed=(m_pad * 2 * 4
                        + grid[0] * max_len_pad * dim_pad * 4
                        + m_pad * dim_pad * 4),
    )

    out = pl.pallas_call(
        _pe2d_kernel,
        out_shape=jax.ShapeDtypeStruct((m_pad, dim_pad), jnp.float32),
        grid_spec=pl.GridSpec(
            grid=grid,
            in_specs=[
                pl.BlockSpec((tile_m, 2), lambda i, k: (i, 0)),          # (x, y) indices
                pl.BlockSpec((tile_k, dim_pad), lambda i, k: (k, 0)),    # pe K-slab
            ],
            out_specs=pl.BlockSpec((tile_m, dim_pad), lambda i, k: (i, 0)),
        ),
        compiler_params=pltpu.CompilerParams(
            dimension_semantics=("parallel", "arbitrary"),
            vmem_limit_bytes=32 * 1024 * 1024),
        cost_estimate=cost,
    )(c, pe_p)

    return out[:m, :dim].reshape(lead_shape + (dim,))


if __name__ == "__main__":
    # Small shapes: batch=2, seq (num patches)=8, dim=32, max_len=128.
    dim = 32
    max_len = 128
    B, N = 2, 8

    pe = _make_pe_table(dim, max_len)

    key = jax.random.PRNGKey(0)
    coords = jax.random.randint(key, (B, N, 2), 0, max_len, dtype=jnp.int32)

    out = positional_encoding_2d(coords, pe)
    out = jax.block_until_ready(out)

    # Pure-JAX reference of the torch forward: pe[coords[...,0]] + pe[coords[...,1]]
    ref = pe[coords[..., 0]] + pe[coords[..., 1]]
    assert out.shape == (B, N, dim)
    assert out.dtype == jnp.float32
    assert jnp.allclose(out, ref, atol=1e-5, rtol=1e-5), "mismatch vs reference"

    print("KERNEL_OK")
</pallas_src>

<mosaic_0001>
module attributes {stable_mosaic.version = 11 : i64} {
  func.func @_pe2d_kernel(%arg0: i32, %arg1: i32, %arg2: memref<16x2xi32, #tpu.memory_space<vmem>>, %arg3: memref<256x128xf32, #tpu.memory_space<vmem>>, %arg4: memref<16x128xf32, #tpu.memory_space<vmem>>) attributes {dimension_semantics = [#tpu.dimension_semantics<parallel>, #tpu.dimension_semantics<arbitrary>], iteration_bounds = array<i64: 1, 1>, scalar_prefetch = 0 : i64, scratch_operands = 0 : i64, tpu.core_type = #tpu.core_type<tc>, window_params = [{transform_indices = @transform_0, window_bounds = array<i64: 16, 2>}, {transform_indices = @transform_1, window_bounds = array<i64: 256, 128>}, {transform_indices = @transform_2, window_bounds = array<i64: 16, 128>}]} {
    %c0_i32 = arith.constant 0 : i32
    %0 = arith.cmpi eq, %arg1, %c0_i32 : i32
    %1 = arith.extui %0 : i1 to i32
    %c0_i32_0 = arith.constant 0 : i32
    %2 = arith.cmpi ne, %1, %c0_i32_0 : i32
    scf.if %2 {
      %cst_8 = arith.constant 0.000000e+00 : f32
      %24 = vector.broadcast %cst_8 : f32 to vector<16x128xf32>
      %c0_9 = arith.constant 0 : index
      %c0_10 = arith.constant 0 : index
      %25 = vector.load %arg4[%c0_9, %c0_10] : memref<16x128xf32, #tpu.memory_space<vmem>>, vector<16x128xf32>
      tpu.vector_store %arg4[%c0_9, %c0_10], %24 {strides = array<i32>} : memref<16x128xf32, #tpu.memory_space<vmem>>, vector<16x128xf32>,
    } else {
    }
    %c0 = arith.constant 0 : index
    %c0_1 = arith.constant 0 : index
    %3 = vector.load %arg2[%c0, %c0_1] : memref<16x2xi32, #tpu.memory_space<vmem>>, vector<16x2xi32>
    %4 = vector.extract_strided_slice %3 {offsets = [0, 0], sizes = [16, 1], strides = [1, 1]} : vector<16x2xi32> to vector<16x1xi32>
    %5 = vector.extract_strided_slice %3 {offsets = [0, 1], sizes = [16, 1], strides = [1, 1]} : vector<16x2xi32> to vector<16x1xi32>
    %c256_i32 = arith.constant 256 : i32
    %6 = arith.muli %arg1, %c256_i32 : i32
    %7 = tpu.iota {dimensions = array<i32: 1>} : vector<16x256xi32>
    %8 = vector.broadcast %6 : i32 to vector<16x256xi32>
    %9 = arith.addi %8, %7 : vector<16x256xi32>
    %10 = vector.broadcast %4 : vector<16x1xi32> to vector<16x256xi32>
    %11 = arith.cmpi eq, %9, %10 : vector<16x256xi32>
    %12 = arith.extui %11 : vector<16x256xi1> to vector<16x256xi32>
    %13 = arith.sitofp %12 : vector<16x256xi32> to vector<16x256xf32>
    %14 = vector.broadcast %5 : vector<16x1xi32> to vector<16x256xi32>
    %15 = arith.cmpi eq, %9, %14 : vector<16x256xi32>
    %16 = arith.extui %15 : vector<16x256xi1> to vector<16x256xi32>
    %17 = arith.sitofp %16 : vector<16x256xi32> to vector<16x256xf32>
    %18 = arith.addf %13, %17 : vector<16x256xf32>
    %c0_2 = arith.constant 0 : index
    %c0_3 = arith.constant 0 : index
    %19 = vector.load %arg4[%c0_2, %c0_3] : memref<16x128xf32, #tpu.memory_space<vmem>>, vector<16x128xf32>
    %c0_4 = arith.constant 0 : index
    %c0_5 = arith.constant 0 : index
    %20 = vector.load %arg3[%c0_4, %c0_5] : memref<256x128xf32, #tpu.memory_space<vmem>>, vector<256x128xf32>
    %cst = arith.constant dense<0.000000e+00> : vector<16x128xf32>
    %21 = tpu.matmul %18, %20, %cst {dimension_numbers = #tpu.dot_dimension_numbers<[1], [0], [0], [1], [0, 0, 1, 1], [], []>} : vector<16x256xf32>, vector<256x128xf32>, vector<16x128xf32> -> vector<16x128xf32>
    %22 = arith.addf %19, %21 : vector<16x128xf32>
    %c0_6 = arith.constant 0 : index
    %c0_7 = arith.constant 0 : index
    %23 = vector.load %arg4[%c0_6, %c0_7] : memref<16x128xf32, #tpu.memory_space<vmem>>, vector<16x128xf32>
    tpu.vector_store %arg4[%c0_6, %c0_7], %22 {strides = array<i32>} : memref<16x128xf32, #tpu.memory_space<vmem>>, vector<16x128xf32>,
    return
  }
  func.func @transform_0(%arg0: i32, %arg1: i32) -> (i32, i32) {
    %c0_i32 = arith.constant 0 : i32
    %c0_i32_0 = arith.constant 0 : i32
    return %arg0, %c0_i32 : i32, i32
  }
  func.func @transform_1(%arg0: i32, %arg1: i32) -> (i32, i32) {
    %c0_i32 = arith.constant 0 : i32
    %c0_i32_0 = arith.constant 0 : i32
    return %arg1, %c0_i32 : i32, i32
  }
  func.func @transform_2(%arg0: i32, %arg1: i32) -> (i32, i32) {
    %c0_i32 = arith.constant 0 : i32
    %c0_i32_0 = arith.constant 0 : i32
    return %arg0, %c0_i32 : i32, i32
  }
}

</mosaic_0001>

<bundles_post_ra>
// kernel: tpu_custom_call.1
= control target key start
LH: loop header
LB: loop body
LE: loop exit
PB: predicated region body
PF: predicated region fallthrough
CT: control target
= control target key end

     0   :  { %7 = vsyncpa [#allocation3], 0  ;;  %s329_s0 = inlined_call_operand.vmem [shape: s32[16,2], index: 0, kind: input, shape index: {}]   ;;  %s330_s1 = inlined_call_operand.hbm [shape: f32[256,128], index: 1, kind: input, shape index: {}]   ;;  %s331_s2 = inlined_call_operand.hbm [shape: f32[16,128], index: 2, kind: output, shape index: {}]  }
   0x1   :  { %8 = vsyncpa [#allocation4], 0  ;;  %s15_s11 = sshll.u32 %s330_s1, 4  ;;  %s289_s12 = smov [#allocation2]   ;;  %s16_s11 = int_to_ptr.hbm [resolvable:$true] %s15_s11 }
   0x2   :  { %s17_s13 = sshll.u32 %s289_s12, 4  ;;  %s290_s14 = smov 128   ;;  %s18_s13 = int_to_ptr.vmem [resolvable:$true] %s17_s13 }
   0x3   :  { %s291_s15 = smov 8  }
   0x4   :  { %23 = dma.hbm_to_vmem [thread:$0]  %s16_s11, 4096, %s18_s13, [#allocation3], %s290_s14, %s290_s14, %s291_s15  }
   0x5   :  { %285 = dma.done.wait [#allocation3], 4096  }
   0x6   :  { %286 = vsyncadd [#allocation3], 4294963200  ;;  %v292_v0 = vmov 0   ;;  %v35_v1 = vld [vmem:[%s329_s0 + $0x8] sm:$0xff]  ;;  %v34_v2 = vld [vmem:[%s329_s0] sm:$0xff]  ;;  %v293_v11 = vmov 1   ;;  %v37_v36 = vlaneseq }
   0x7   :  { %235 = vset.pattern.permute.xlu1 %v292_v0  ;;  %233 = vset.pattern.permute.xlu0 %v292_v0  ;;  %v100_v3 = vld [vmem:[#allocation2 + $0x78] sm:$0xff]  ;;  %v99_v5 = vld [vmem:[#allocation2 + $0x70] sm:$0xff]  ;;  %v98_v7 = vld [vmem:[#allocation2 + $0x68] sm:$0xff]  ;;  %v294_v43 = vmov 0.0   ;;  %s295_s0 = smov [#allocation5]   ;;  %s173_s22 = sshll.u32 %s331_s2, 4  ;;  %s174_s22 = int_to_ptr.hbm [resolvable:$true] %s173_s22 }
   0x8   :  { %47 = vperm.xlu0 %233, %v35_v1   ;;  %44 = vperm.xlu1 %235, %v34_v2   ;;  %v116_v4 = vld [vmem:[#allocation2 + $0xf8] sm:$0xff]  ;;  %v115_v6 = vld [vmem:[#allocation2 + $0xf0] sm:$0xff]  ;;  %v114_v8 = vld [vmem:[#allocation2 + $0xe8] sm:$0xff]  ;;  %v38_v37 = vand.u32 127, %v37_v36  ;;  %s171_s19 = sshll.u32 %s295_s0, 4  ;;  %s172_s19 = int_to_ptr.vmem [resolvable:$true] %s171_s19 }
   0x9   :  { %117 = vmatpush.msra.mxu0 %v100_v3  ;;  %194 = vmatpush.msra.mxu2 %v100_v3  ;;  %v97_v9 = vld [vmem:[#allocation2 + $0x60] sm:$0xff]  ;;  %v96_v12 = vld [vmem:[#allocation2 + $0x58] sm:$0xff]  ;;  %v95_v14 = vld [vmem:[#allocation2 + $0x50] sm:$0xff] }
   0xa   :  { %140 = vmatpush.msra.mxu1 %v116_v4  ;;  %210 = vmatpush.msra.mxu3 %v116_v4  ;;  %v113_v10 = vld [vmem:[#allocation2 + $0xe0] sm:$0xff]  ;;  %v112_v13 = vld [vmem:[#allocation2 + $0xd8] sm:$0xff]  ;;  %v111_v15 = vld [vmem:[#allocation2 + $0xd0] sm:$0xff]  ;;  %v39_v40 = vadd.s32 128, %v38_v37 }
   0xb   :  { %118 = vmatpush.msra.mxu0 %v99_v5  ;;  %195 = vmatpush.msra.mxu2 %v99_v5  ;;  %v94_v16 = vld [vmem:[#allocation2 + $0x48] sm:$0xff]  ;;  %v93_v18 = vld [vmem:[#allocation2 + $0x40] sm:$0xff]  ;;  %v92_v20 = vld [vmem:[#allocation2 + $0x38] sm:$0xff] }
   0xc   :  { %141 = vmatpush.msra.mxu1 %v115_v6  ;;  %211 = vmatpush.msra.mxu3 %v115_v6  ;;  %v110_v17 = vld [vmem:[#allocation2 + $0xc8] sm:$0xff]  ;;  %v109_v19 = vld [vmem:[#allocation2 + $0xc0] sm:$0xff]  ;;  %v108_v21 = vld [vmem:[#allocation2 + $0xb8] sm:$0xff] }
   0xd   :  { %119 = vmatpush.msra.mxu0 %v98_v7  ;;  %196 = vmatpush.msra.mxu2 %v98_v7  ;;  %v91_v22 = vld [vmem:[#allocation2 + $0x30] sm:$0xff]  ;;  %v90_v24 = vld [vmem:[#allocation2 + $0x28] sm:$0xff]  ;;  %v89_v26 = vld [vmem:[#allocation2 + $0x20] sm:$0xff] }
   0xe   :  { %142 = vmatpush.msra.mxu1 %v114_v8  ;;  %212 = vmatpush.msra.mxu3 %v114_v8  ;;  %v107_v23 = vld [vmem:[#allocation2 + $0xb0] sm:$0xff]  ;;  %v106_v25 = vld [vmem:[#allocation2 + $0xa8] sm:$0xff]  ;;  %v105_v27 = vld [vmem:[#allocation2 + $0xa0] sm:$0xff] }
   0xf   :  { %120 = vmatpush.msra.mxu0 %v97_v9  ;;  %197 = vmatpush.msra.mxu2 %v97_v9  ;;  %v88_v28 = vld [vmem:[#allocation2 + $0x18] sm:$0xff]  ;;  %v87_v30 = vld [vmem:[#allocation2 + $0x10] sm:$0xff]  ;;  %v86_v32 = vld [vmem:[#allocation2 + $0x8] sm:$0xff] }
  0x10   :  { %234 = vset.pattern.permute.xlu0 %v293_v11  ;;  %236 = vset.pattern.permute.xlu1 %v293_v11  ;;  %v104_v29 = vld [vmem:[#allocation2 + $0x98] sm:$0xff]  ;;  %v103_v31 = vld [vmem:[#allocation2 + $0x90] sm:$0xff]  ;;  %v102_v33 = vld [vmem:[#allocation2 + $0x88] sm:$0xff] }
  0x11   :  { %65 = vperm.xlu0 %234, %v35_v1   ;;  %62 = vperm.xlu1 %236, %v34_v2   ;;  %v85_v34 = vld [vmem:[#allocation2] sm:$0xff] }
  0x12   :  { %143 = vmatpush.msra.mxu1 %v113_v10  ;;  %213 = vmatpush.msra.mxu3 %v113_v10  ;;  %v101_v35 = vld [vmem:[#allocation2 + $0x80] sm:$0xff] }
  0x13   :  { %121 = vmatpush.msra.mxu0 %v96_v12  ;;  %198 = vmatpush.msra.mxu2 %v96_v12 }
  0x14   :  { %144 = vmatpush.msra.mxu1 %v112_v13  ;;  %214 = vmatpush.msra.mxu3 %v112_v13 }
  0x15   :  { %122 = vmatpush.msra.mxu0 %v95_v14  ;;  %199 = vmatpush.msra.mxu2 %v95_v14 }
  0x16   :  { %145 = vmatpush.msra.mxu1 %v111_v15  ;;  %215 = vmatpush.msra.mxu3 %v111_v15 }
  0x17   :  { %123 = vmatpush.msra.mxu0 %v94_v16  ;;  %200 = vmatpush.msra.mxu2 %v94_v16 }
  0x18   :  { %146 = vmatpush.msra.mxu1 %v110_v17  ;;  %216 = vmatpush.msra.mxu3 %v110_v17 }
  0x19   :  { %124 = vmatpush.msra.mxu0 %v93_v18  ;;  %201 = vmatpush.msra.mxu2 %v93_v18 }
  0x1a   :  { %147 = vmatpush.msra.mxu1 %v109_v19  ;;  %217 = vmatpush.msra.mxu3 %v109_v19 }
  0x1b   :  { %125 = vmatpush.msra.mxu0 %v92_v20  ;;  %202 = vmatpush.msra.mxu2 %v92_v20 }
  0x1c   :  { %148 = vmatpush.msra.mxu1 %v108_v21  ;;  %218 = vmatpush.msra.mxu3 %v108_v21 }
  0x1d   :  { %126 = vmatpush.msra.mxu0 %v91_v22  ;;  %203 = vmatpush.msra.mxu2 %v91_v22 }
  0x1e   :  { %149 = vmatpush.msra.mxu1 %v107_v23  ;;  %219 = vmatpush.msra.mxu3 %v107_v23 }
  0x1f   :  { %127 = vmatpush.msra.mxu0 %v90_v24  ;;  %204 = vmatpush.msra.mxu2 %v90_v24 }
  0x20   :  { %150 = vmatpush.msra.mxu1 %v106_v25  ;;  %220 = vmatpush.msra.mxu3 %v106_v25 }
  0x21   :  { %128 = vmatpush.msra.mxu0 %v89_v26  ;;  %205 = vmatpush.msra.mxu2 %v89_v26 }
  0x22   :  { %151 = vmatpush.msra.mxu1 %v105_v27  ;;  %221 = vmatpush.msra.mxu3 %v105_v27 }
  0x23   :  { %129 = vmatpush.msra.mxu0 %v88_v28  ;;  %206 = vmatpush.msra.mxu2 %v88_v28 }
  0x24   :  { %152 = vmatpush.msra.mxu1 %v104_v29  ;;  %222 = vmatpush.msra.mxu3 %v104_v29 }
  0x25   :  { %130 = vmatpush.msra.mxu0 %v87_v30  ;;  %207 = vmatpush.msra.mxu2 %v87_v30 }
  0x26   :  { %153 = vmatpush.msra.mxu1 %v103_v31  ;;  %223 = vmatpush.msra.mxu3 %v103_v31 }
  0x27   :  { %131 = vmatpush.msra.mxu0 %v86_v32  ;;  %208 = vmatpush.msra.mxu2 %v86_v32 }
  0x28   :  { %154 = vmatpush.msra.mxu1 %v102_v33  ;;  %224 = vmatpush.msra.mxu3 %v102_v33 }
  0x29   :  { %132 = vmatpush.msra.mxu0 %v85_v34  ;;  %209 = vmatpush.msra.mxu2 %v85_v34 }
  0x2a   :  { %155 = vmatpush.msra.mxu1 %v101_v35  ;;  %225 = vmatpush.msra.mxu3 %v101_v35 }
  0x7a   :  { %v48_v38 = vpop.permute.xlu0 %47  ;;  %v45_v39 = vpop.permute.xlu1 %44 }
  0x7b   :  { %vm51_vm0 = vcmp.eq.s32.totalorder %v38_v37, %v48_v38  ;;  %vm52_vm1 = vcmp.eq.s32.totalorder %v39_v40, %v48_v38  ;;  %vm49_vm2 = vcmp.eq.s32.totalorder %v38_v37, %v45_v39  ;;  %vm50_vm3 = vcmp.eq.s32.totalorder %v39_v40, %v45_v39 }
  0x7c   :  { %v186_v44 = vsel %vm49_vm2, 1.0, %v294_v43  ;;  %v188_v45 = vsel %vm51_vm0, 1.0, %v294_v43  ;;  %v187_v46 = vsel %vm50_vm3, 1.0, %v294_v43  ;;  %v189_v47 = vsel %vm52_vm1, 1.0, %v294_v43 }
  0x83   :  { %v66_v41 = vpop.permute.xlu0 %65  ;;  %v63_v42 = vpop.permute.xlu1 %62 }
  0x84   :  { %vm69_vm4 = vcmp.eq.s32.totalorder %v38_v37, %v66_v41  ;;  %vm70_vm5 = vcmp.eq.s32.totalorder %v39_v40, %v66_v41  ;;  %vm67_vm6 = vcmp.eq.s32.totalorder %v38_v37, %v63_v42  ;;  %vm68_vm7 = vcmp.eq.s32.totalorder %v39_v40, %v63_v42 }
  0x85   :  { %v192_v48 = vsel %vm69_vm4, 1.0, %v294_v43  ;;  %v193_v49 = vsel %vm70_vm5, 1.0, %v294_v43  ;;  %v190_v50 = vsel %vm67_vm6, 1.0, %v294_v43  ;;  %v191_v51 = vsel %vm68_vm7, 1.0, %v294_v43 }
  0x86   :  { %v79_v52 = vadd.f32 %v190_v50, %v186_v44  ;;  %v81_v53 = vadd.f32 %v192_v48, %v188_v45  ;;  %v80_v54 = vadd.f32 %v191_v51, %v187_v46  ;;  %v82_v55 = vadd.f32 %v193_v49, %v189_v47 }
  0x88   :  { %133 = vmatmul.f32.vlgmr.msra.gmra.mxu0 %v79_v52  ;;  %136 = vmatmul.f32.vlgmr.msra.gmra.mxu2 %v81_v53 }
  0x89   :  { %156 = vmatmul.f32.vlgmr.msra.gmra.mxu1 %v80_v54  ;;  %159 = vmatmul.f32.vlgmr.msra.gmra.mxu3 %v82_v55 }
 0x105   :  { %v134_v56 = vpop.f32.mrf.mxu0 }
 0x106   :  { %v157_v57 = vpop.f32.mrf.mxu1 }
 0x107   :  { %v158_v58 = vadd.f32 %v157_v57, %v134_v56 }
 0x109   :  { %165 = vst [vmem:[#allocation5] sm:$0xff] %v158_v58 }
 0x10b   :  { %v137_v59 = vpop.f32.mrf.mxu2 }
 0x10c   :  { %v160_v60 = vpop.f32.mrf.mxu3 }
 0x10d   :  { %v161_v61 = vadd.f32 %v160_v60, %v137_v59 }
 0x10f   :  { %166 = vst [vmem:[#allocation5 + $0x8] sm:$0xff] %v161_v61 }
 0x110   :  { %179 = dma.vmem_to_hbm [thread:$0]  %s172_s19, 256, %s174_s22, [#allocation4], %s290_s14, %s290_s14, %s291_s15  }
 0x111   :  { %287 = dma.done.wait [#allocation4], 256  }
 0x112   :  { %288 = vsyncadd [#allocation4], 4294967040 }
 0x113   :  { %184 = vsyncpa [#allocation3], 1 }
 0x114   :  { %185 = vsyncpa [#allocation4], 1 }

</bundles_post_ra>
